<compile_context>
chip_gen: v7x
topology: tpu7x:2x2x1
jax: 0.10.0
libtpu: 0.0.40
codegen_flags: <defaults>
</compile_context>

<pallas_src>
import functools
import math

import jax
import jax.numpy as jnp
from jax.experimental import pallas as pl
from jax.experimental.pallas import tpu as pltpu

EPS = 1e-5
_INV_SQRT2 = 1.0 / math.sqrt(2.0)


def _cdiv(a, b):
    return -(-a // b)


def _round_up(a, b):
    return _cdiv(a, b) * b


# ----------------------------- attention kernel ------------------------------

def attention_kernel(x_ref, g_ref, b_ref, wq_ref, wk_ref, wv_ref,
                     o_ref, p_ref, *, n_heads, head_dim):
    x = x_ref[0].astype(jnp.float32)                      # (n, c)

    # Fused single-pass LayerNorm statistics.
    mean = jnp.mean(x, axis=-1, keepdims=True)
    ex2 = jnp.mean(x * x, axis=-1, keepdims=True)
    var = jnp.maximum(ex2 - mean * mean, 0.0)
    xn = (x - mean) * jax.lax.rsqrt(var + EPS) * g_ref[...] + b_ref[...]

    q = jnp.dot(xn, wq_ref[...], preferred_element_type=jnp.float32)
    k = jnp.dot(xn, wk_ref[...], preferred_element_type=jnp.float32)
    v = jnp.dot(xn, wv_ref[...], preferred_element_type=jnp.float32)

    scale = 1.0 / math.sqrt(head_dim)
    outs = []
    for h in range(n_heads):                              # static unroll (small n_heads)
        lo = h * head_dim
        hi = lo + head_dim
        qh = q[:, lo:hi]
        kh = k[:, lo:hi]
        vh = v[:, lo:hi]
        # q @ k^T without an explicit transpose.
        s = jax.lax.dot_general(qh, kh, (((1,), (1,)), ((), ())),
                                preferred_element_type=jnp.float32) * scale
        s = s - jnp.max(s, axis=-1, keepdims=True)
        e = jnp.exp(s)
        p = e / jnp.sum(e, axis=-1, keepdims=True)
        # TODO(synk): training-mode nn.Dropout2d(0.1) on attn_probs not implemented
        # (eval/inference semantics: identity).
        p_ref[0, h] = p.astype(p_ref.dtype)
        outs.append(jnp.dot(p, vh, preferred_element_type=jnp.float32))

    out = jnp.concatenate(outs, axis=-1) + x              # residual with un-normalized x
    o_ref[0] = out.astype(o_ref.dtype)


def attention(x, gamma, beta, wq, wk, wv, *, n_heads):
    """x: (bs, n, c). Returns (out (bs, n, c), attn_probs (bs, n_heads, n, n))."""
    bs, n, c = x.shape
    head_dim = c // n_heads
    kernel = functools.partial(attention_kernel, n_heads=n_heads, head_dim=head_dim)
    full2 = lambda b: (0, 0)

    out, probs = pl.pallas_call(
        kernel,
        out_shape=(
            jax.ShapeDtypeStruct((bs, n, c), x.dtype),
            jax.ShapeDtypeStruct((bs, n_heads, n, n), jnp.float32),
        ),
        grid_spec=pltpu.PrefetchScalarGridSpec(
            num_scalar_prefetch=0,
            grid=(bs,),
            in_specs=[
                pl.BlockSpec((1, n, c), lambda b: (b, 0, 0)),   # x (one batch)
                pl.BlockSpec((1, c), full2),                    # gamma
                pl.BlockSpec((1, c), full2),                    # beta
                pl.BlockSpec((c, c), full2),                    # Wq (in, out)
                pl.BlockSpec((c, c), full2),                    # Wk
                pl.BlockSpec((c, c), full2),                    # Wv
            ],
            out_specs=[
                pl.BlockSpec((1, n, c), lambda b: (b, 0, 0)),
                pl.BlockSpec((1, n_heads, n, n), lambda b: (b, 0, 0, 0)),
            ],
        ),
        compiler_params=pltpu.CompilerParams(dimension_semantics=("parallel",)),
    )(x, gamma, beta, wq, wk, wv)
    return out, probs


# ---------------------------- feedforward kernel -----------------------------

def feedforward_kernel(x_ref, g_ref, b_ref, m_ref, w1_ref, b1_ref, w2_ref, b2_ref, o_ref):
    # x_ref: (tile, P*D) -- P tokens packed per 128-lane slab row.
    x = x_ref[...].astype(jnp.float32)

    # Fused one-pass LayerNorm stats: per-token group mean / E[x^2] via one MXU
    # matmul each with the block-diagonal group-averaging matrix m_ref.
    mean = jnp.dot(x, m_ref[...], preferred_element_type=jnp.float32)
    ex2 = jnp.dot(x * x, m_ref[...], preferred_element_type=jnp.float32)
    var = jnp.maximum(ex2 - mean * mean, 0.0)
    xn = (x - mean) * jax.lax.rsqrt(var + EPS) * g_ref[...] + b_ref[...]

    # Linear 1 (block-diagonal, D -> H per token group) on the MXU.
    h = jnp.dot(xn, w1_ref[...], preferred_element_type=jnp.float32) + b1_ref[...]
    # Exact GELU (nn.GELU default).
    # TODO(synk): tanh-approx GELU would move this to the EUP slot if accuracy allows.
    h = 0.5 * h * (1.0 + jax.lax.erf(h * _INV_SQRT2))
    # Linear 2 (block-diagonal, H -> D per token group) on the MXU.
    y = jnp.dot(h, w2_ref[...], preferred_element_type=jnp.float32) + b2_ref[...]

    # Residual with the un-normalized (packed) input.
    o_ref[...] = (y + x).astype(o_ref.dtype)


def feedforward(x, gamma, beta, w1, b1, w2, b2, *, target_slab_tile=512):
    """x: (rows, D). Per-row LayerNorm -> Linear -> GELU -> Linear + residual."""
    rows, d = x.shape
    hdim = w1.shape[1]

    # Pack P tokens per 128-lane slab row so loads/stores are lane-dense.
    pack = 128 // d if (128 % d == 0) else 1   # TODO(synk): pad D up to 128 when 128 % D != 0
    pd, ph = pack * d, pack * hdim

    eye = jnp.eye(pack, dtype=jnp.float32)
    m_mat = jnp.kron(eye, jnp.ones((d, d), jnp.float32) / d)   # (pd, pd) group-mean matrix
    w1p = jnp.kron(eye, w1.astype(jnp.float32))                # (pd, ph) block-diagonal W1
    w2p = jnp.kron(eye, w2.astype(jnp.float32))                # (ph, pd) block-diagonal W2
    gp = jnp.tile(gamma.reshape(1, d), (1, pack))
    bp = jnp.tile(beta.reshape(1, d), (1, pack))
    b1p = jnp.tile(b1.reshape(1, hdim), (1, pack))
    b2p = jnp.tile(b2.reshape(1, d), (1, pack))

    slab_rows = _cdiv(rows, pack)
    # Big tiles to amortize per-grid-step overhead; keep >= 2 steps when there is
    # enough work so both v7x TensorCores get a share of the "parallel" axis.
    tile = min(target_slab_tile, _round_up(slab_rows, 8))
    if slab_rows >= 16 and _cdiv(slab_rows, tile) < 2:
        tile = _round_up(_cdiv(slab_rows, 2), 8)
    grid_n = _cdiv(slab_rows, tile)
    slab_padded = grid_n * tile
    rows_padded = slab_padded * pack

    # Ragged-tail handling: zero-pad rows, then pack (contiguous reshape, no copy cost).
    xp = jnp.zeros((rows_padded, d), x.dtype).at[:rows].set(x).reshape(slab_padded, pd)

    full2 = lambda i: (0, 0)
    out = pl.pallas_call(
        feedforward_kernel,
        out_shape=jax.ShapeDtypeStruct((slab_padded, pd), x.dtype),
        grid_spec=pltpu.PrefetchScalarGridSpec(
            num_scalar_prefetch=0,
            grid=(grid_n,),
            in_specs=[
                pl.BlockSpec((tile, pd), lambda i: (i, 0)),   # packed x
                pl.BlockSpec((1, pd), full2),                 # gamma (tiled)
                pl.BlockSpec((1, pd), full2),                 # beta  (tiled)
                pl.BlockSpec((pd, pd), full2),                # group-mean matrix
                pl.BlockSpec((pd, ph), full2),                # W1 block-diag
                pl.BlockSpec((1, ph), full2),                 # b1 (tiled)
                pl.BlockSpec((ph, pd), full2),                # W2 block-diag
                pl.BlockSpec((1, pd), full2),                 # b2 (tiled)
            ],
            out_specs=pl.BlockSpec((tile, pd), lambda i: (i, 0)),
        ),
        compiler_params=pltpu.CompilerParams(dimension_semantics=("parallel",)),
    )(xp, gp, bp, m_mat, w1p, b1p, w2p, b2p)

    return out.reshape(rows_padded, d)[:rows]


# ------------------------------- full ViT layer ------------------------------

def vit_layer(x, params):
    bs, n, c = x.shape
    attn_out, attn_probs = attention(
        x, params["ln1_g"], params["ln1_b"],
        params["wq"], params["wk"], params["wv"], n_heads=params["n_heads"])
    ff_out = feedforward(
        attn_out.reshape(bs * n, c),
        params["ln2_g"], params["ln2_b"],
        params["w1"], params["b1"], params["w2"], params["b2"])
    return ff_out.reshape(bs, n, c), attn_probs


# --------------------------- pure-JAX reference -------------------------------

def vit_layer_ref(x, params):
    bs, n, c = x.shape
    nh = params["n_heads"]
    hd = c // nh
    xf = x.astype(jnp.float32)

    # attention block
    mean = jnp.mean(xf, -1, keepdims=True)
    var = jnp.mean((xf - mean) ** 2, -1, keepdims=True)
    xn = (xf - mean) * jax.lax.rsqrt(var + EPS) * params["ln1_g"] + params["ln1_b"]
    q = (xn @ params["wq"]).reshape(bs, n, nh, hd).transpose(0, 2, 1, 3)
    k = (xn @ params["wk"]).reshape(bs, n, nh, hd).transpose(0, 2, 1, 3)
    v = (xn @ params["wv"]).reshape(bs, n, nh, hd).transpose(0, 2, 1, 3)
    s = jnp.einsum("bhid,bhjd->bhij", q, k) / math.sqrt(hd)
    p = jax.nn.softmax(s, axis=-1)
    a = jnp.einsum("bhij,bhjd->bhid", p, v)
    a = a.transpose(0, 2, 1, 3).reshape(bs, n, c) + xf

    # feedforward block
    mean2 = jnp.mean(a, -1, keepdims=True)
    var2 = jnp.mean((a - mean2) ** 2, -1, keepdims=True)
    an = (a - mean2) * jax.lax.rsqrt(var2 + EPS) * params["ln2_g"] + params["ln2_b"]
    h = an @ params["w1"] + params["b1"]
    h = 0.5 * h * (1.0 + jax.lax.erf(h * _INV_SQRT2))
    y = h @ params["w2"] + params["b2"]
    out = y + a
    return out.astype(x.dtype), p


if __name__ == "__main__":
    key = jax.random.PRNGKey(0)
    ks = jax.random.split(key, 12)

    batch, seq = 2, 8
    n_heads, model_dim, ff_dim = 4, 32, 64

    x = jax.random.normal(ks[0], (batch, seq, model_dim), dtype=jnp.float32)

    lim_d = 1.0 / math.sqrt(model_dim)
    lim_h = 1.0 / math.sqrt(ff_dim)
    params = {
        "n_heads": n_heads,
        "ln1_g": 1.0 + 0.1 * jax.random.normal(ks[1], (1, model_dim), jnp.float32),
        "ln1_b": 0.1 * jax.random.normal(ks[2], (1, model_dim), jnp.float32),
        "wq": jax.random.uniform(ks[3], (model_dim, model_dim), jnp.float32, -lim_d, lim_d),
        "wk": jax.random.uniform(ks[4], (model_dim, model_dim), jnp.float32, -lim_d, lim_d),
        "wv": jax.random.uniform(ks[5], (model_dim, model_dim), jnp.float32, -lim_d, lim_d),
        "ln2_g": 1.0 + 0.1 * jax.random.normal(ks[6], (1, model_dim), jnp.float32),
        "ln2_b": 0.1 * jax.random.normal(ks[7], (1, model_dim), jnp.float32),
        "w1": jax.random.uniform(ks[8], (model_dim, ff_dim), jnp.float32, -lim_d, lim_d),
        "b1": jax.random.uniform(ks[9], (1, ff_dim), jnp.float32, -lim_d, lim_d),
        "w2": jax.random.uniform(ks[10], (ff_dim, model_dim), jnp.float32, -lim_h, lim_h),
        "b2": jax.random.uniform(ks[11], (1, model_dim), jnp.float32, -lim_h, lim_h),
    }

    out, probs = vit_layer(x, params)
    out = jax.block_until_ready(out)
    probs = jax.block_until_ready(probs)

    ref_out, ref_probs = vit_layer_ref(x, params)

    assert out.shape == (batch, seq, model_dim)
    assert probs.shape == (batch, n_heads, seq, seq)
    assert jnp.allclose(probs, ref_probs, atol=1e-4, rtol=1e-4), "attn_probs mismatch vs reference"
    assert jnp.allclose(out, ref_out, atol=2e-4, rtol=2e-4), "output mismatch vs reference"

    print("KERNEL_OK")
</pallas_src>

<mosaic_0001>
module attributes {stable_mosaic.version = 11 : i64} {
  func.func @attention_kernel(%arg0: i32, %arg1: memref<1x8x32xf32, #tpu.memory_space<vmem>>, %arg2: memref<1x32xf32, #tpu.memory_space<vmem>>, %arg3: memref<1x32xf32, #tpu.memory_space<vmem>>, %arg4: memref<32x32xf32, #tpu.memory_space<vmem>>, %arg5: memref<32x32xf32, #tpu.memory_space<vmem>>, %arg6: memref<32x32xf32, #tpu.memory_space<vmem>>, %arg7: memref<1x8x32xf32, #tpu.memory_space<vmem>>, %arg8: memref<1x4x8x8xf32, #tpu.memory_space<vmem>>) attributes {dimension_semantics = [#tpu.dimension_semantics<parallel>], iteration_bounds = array<i64: 2>, scalar_prefetch = 0 : i64, scratch_operands = 0 : i64, tpu.core_type = #tpu.core_type<tc>, window_params = [{transform_indices = @transform_0, window_bounds = array<i64: 1, 8, 32>}, {pipeline_mode = #tpu.pipeline_mode<synchronous>, transform_indices = @transform_1, window_bounds = array<i64: 1, 32>}, {pipeline_mode = #tpu.pipeline_mode<synchronous>, transform_indices = @transform_2, window_bounds = array<i64: 1, 32>}, {pipeline_mode = #tpu.pipeline_mode<synchronous>, transform_indices = @transform_3, window_bounds = array<i64: 32, 32>}, {pipeline_mode = #tpu.pipeline_mode<synchronous>, transform_indices = @transform_4, window_bounds = array<i64: 32, 32>}, {pipeline_mode = #tpu.pipeline_mode<synchronous>, transform_indices = @transform_5, window_bounds = array<i64: 32, 32>}, {transform_indices = @transform_6, window_bounds = array<i64: 1, 8, 32>}, {transform_indices = @transform_7, window_bounds = array<i64: 1, 4, 8, 8>}]} {
    %c0 = arith.constant 0 : index
    %c0_0 = arith.constant 0 : index
    %c0_1 = arith.constant 0 : index
    %0 = vector.load %arg1[%c0, %c0_0, %c0_1] : memref<1x8x32xf32, #tpu.memory_space<vmem>>, vector<1x8x32xf32>
    %1 = vector.shape_cast %0 : vector<1x8x32xf32> to vector<8x32xf32>
    %cst = arith.constant dense<0.000000e+00> : vector<8xf32>
    %2 = vector.multi_reduction <add>, %1, %cst [1] : vector<8x32xf32> to vector<8xf32>
    %3 = vector.shape_cast %2 : vector<8xf32> to vector<8x1xf32>
    %cst_2 = arith.constant 3.200000e+01 : f32
    %4 = vector.broadcast %cst_2 : f32 to vector<8x1xf32>
    %5 = arith.divf %3, %4 : vector<8x1xf32>
    %6 = arith.mulf %1, %1 : vector<8x32xf32>
    %cst_3 = arith.constant dense<0.000000e+00> : vector<8xf32>
    %7 = vector.multi_reduction <add>, %6, %cst_3 [1] : vector<8x32xf32> to vector<8xf32>
    %8 = vector.shape_cast %7 : vector<8xf32> to vector<8x1xf32>
    %cst_4 = arith.constant 3.200000e+01 : f32
    %9 = vector.broadcast %cst_4 : f32 to vector<8x1xf32>
    %10 = arith.divf %8, %9 : vector<8x1xf32>
    %11 = arith.mulf %5, %5 : vector<8x1xf32>
    %12 = arith.subf %10, %11 : vector<8x1xf32>
    %cst_5 = arith.constant 0.000000e+00 : f32
    %13 = vector.broadcast %cst_5 : f32 to vector<8x1xf32>
    %14 = arith.maximumf %12, %13 : vector<8x1xf32>
    %15 = vector.broadcast %5 : vector<8x1xf32> to vector<8x32xf32>
    %16 = arith.subf %1, %15 : vector<8x32xf32>
    %cst_6 = arith.constant 9.99999974E-6 : f32
    %17 = vector.broadcast %cst_6 : f32 to vector<8x1xf32>
    %18 = arith.addf %14, %17 : vector<8x1xf32>
    %19 = math.rsqrt %18 : vector<8x1xf32>
    %20 = vector.broadcast %19 : vector<8x1xf32> to vector<8x32xf32>
    %21 = arith.mulf %16, %20 : vector<8x32xf32>
    %c0_7 = arith.constant 0 : index
    %c0_8 = arith.constant 0 : index
    %22 = vector.load %arg2[%c0_7, %c0_8] : memref<1x32xf32, #tpu.memory_space<vmem>>, vector<1x32xf32>
    %23 = vector.broadcast %22 : vector<1x32xf32> to vector<8x32xf32>
    %24 = arith.mulf %21, %23 : vector<8x32xf32>
    %c0_9 = arith.constant 0 : index
    %c0_10 = arith.constant 0 : index
    %25 = vector.load %arg3[%c0_9, %c0_10] : memref<1x32xf32, #tpu.memory_space<vmem>>, vector<1x32xf32>
    %26 = vector.broadcast %25 : vector<1x32xf32> to vector<8x32xf32>
    %27 = arith.addf %24, %26 : vector<8x32xf32>
    %c0_11 = arith.constant 0 : index
    %c0_12 = arith.constant 0 : index
    %28 = vector.load %arg4[%c0_11, %c0_12] : memref<32x32xf32, #tpu.memory_space<vmem>>, vector<32x32xf32>
    %cst_13 = arith.constant dense<0.000000e+00> : vector<8x32xf32>
    %29 = tpu.matmul %27, %28, %cst_13 {dimension_numbers = #tpu.dot_dimension_numbers<[1], [0], [0], [1], [0, 0, 1, 1], [], []>} : vector<8x32xf32>, vector<32x32xf32>, vector<8x32xf32> -> vector<8x32xf32>
    %c0_14 = arith.constant 0 : index
    %c0_15 = arith.constant 0 : index
    %30 = vector.load %arg5[%c0_14, %c0_15] : memref<32x32xf32, #tpu.memory_space<vmem>>, vector<32x32xf32>
    %cst_16 = arith.constant dense<0.000000e+00> : vector<8x32xf32>
    %31 = tpu.matmul %27, %30, %cst_16 {dimension_numbers = #tpu.dot_dimension_numbers<[1], [0], [0], [1], [0, 0, 1, 1], [], []>} : vector<8x32xf32>, vector<32x32xf32>, vector<8x32xf32> -> vector<8x32xf32>
    %c0_17 = arith.constant 0 : index
    %c0_18 = arith.constant 0 : index
    %32 = vector.load %arg6[%c0_17, %c0_18] : memref<32x32xf32, #tpu.memory_space<vmem>>, vector<32x32xf32>
    %cst_19 = arith.constant dense<0.000000e+00> : vector<8x32xf32>
    %33 = tpu.matmul %27, %32, %cst_19 {dimension_numbers = #tpu.dot_dimension_numbers<[1], [0], [0], [1], [0, 0, 1, 1], [], []>} : vector<8x32xf32>, vector<32x32xf32>, vector<8x32xf32> -> vector<8x32xf32>
    %34 = vector.extract_strided_slice %29 {offsets = [0, 0], sizes = [8, 8], strides = [1, 1]} : vector<8x32xf32> to vector<8x8xf32>
    %35 = vector.extract_strided_slice %31 {offsets = [0, 0], sizes = [8, 8], strides = [1, 1]} : vector<8x32xf32> to vector<8x8xf32>
    %36 = vector.extract_strided_slice %33 {offsets = [0, 0], sizes = [8, 8], strides = [1, 1]} : vector<8x32xf32> to vector<8x8xf32>
    %cst_20 = arith.constant dense<0.000000e+00> : vector<8x8xf32>
    %37 = tpu.matmul %34, %35, %cst_20 {dimension_numbers = #tpu.dot_dimension_numbers<[1], [1], [0], [0], [0, 0, 1, 0], [], []>} : vector<8x8xf32>, vector<8x8xf32>, vector<8x8xf32> -> vector<8x8xf32>
    %cst_21 = arith.constant 0.353553385 : f32
    %38 = vector.broadcast %cst_21 : f32 to vector<8x8xf32>
    %39 = arith.mulf %37, %38 : vector<8x8xf32>
    %cst_22 = arith.constant dense<0xFF800000> : vector<8xf32>
    %40 = vector.multi_reduction <maximumf>, %39, %cst_22 [1] : vector<8x8xf32> to vector<8xf32>
    %41 = vector.shape_cast %40 : vector<8xf32> to vector<8x1xf32>
    %42 = vector.broadcast %41 : vector<8x1xf32> to vector<8x8xf32>
    %43 = arith.subf %39, %42 : vector<8x8xf32>
    %44 = math.exp %43 : vector<8x8xf32>
    %cst_23 = arith.constant dense<0.000000e+00> : vector<8xf32>
    %45 = vector.multi_reduction <add>, %44, %cst_23 [1] : vector<8x8xf32> to vector<8xf32>
    %46 = vector.shape_cast %45 : vector<8xf32> to vector<8x1xf32>
    %47 = vector.broadcast %46 : vector<8x1xf32> to vector<8x8xf32>
    %48 = arith.divf %44, %47 : vector<8x8xf32>
    %c0_24 = arith.constant 0 : index
    %c0_25 = arith.constant 0 : index
    %c0_26 = arith.constant 0 : index
    %c0_27 = arith.constant 0 : index
    %49 = vector.load %arg8[%c0_24, %c0_25, %c0_26, %c0_27] : memref<1x4x8x8xf32, #tpu.memory_space<vmem>>, vector<1x1x8x8xf32>
    %50 = vector.shape_cast %49 : vector<1x1x8x8xf32> to vector<8x8xf32>
    %51 = vector.shape_cast %48 : vector<8x8xf32> to vector<1x1x8x8xf32>
    tpu.vector_store %arg8[%c0_24, %c0_25, %c0_26, %c0_27], %51 {strides = array<i32>} : memref<1x4x8x8xf32, #tpu.memory_space<vmem>>, vector<1x1x8x8xf32>,
    %cst_28 = arith.constant dense<0.000000e+00> : vector<8x8xf32>
    %52 = tpu.matmul %48, %36, %cst_28 {dimension_numbers = #tpu.dot_dimension_numbers<[1], [0], [0], [1], [0, 0, 1, 1], [], []>} : vector<8x8xf32>, vector<8x8xf32>, vector<8x8xf32> -> vector<8x8xf32>
    %53 = vector.extract_strided_slice %29 {offsets = [0, 8], sizes = [8, 8], strides = [1, 1]} : vector<8x32xf32> to vector<8x8xf32>
    %54 = vector.extract_strided_slice %31 {offsets = [0, 8], sizes = [8, 8], strides = [1, 1]} : vector<8x32xf32> to vector<8x8xf32>
    %55 = vector.extract_strided_slice %33 {offsets = [0, 8], sizes = [8, 8], strides = [1, 1]} : vector<8x32xf32> to vector<8x8xf32>
    %cst_29 = arith.constant dense<0.000000e+00> : vector<8x8xf32>
    %56 = tpu.matmul %53, %54, %cst_29 {dimension_numbers = #tpu.dot_dimension_numbers<[1], [1], [0], [0], [0, 0, 1, 0], [], []>} : vector<8x8xf32>, vector<8x8xf32>, vector<8x8xf32> -> vector<8x8xf32>
    %cst_30 = arith.constant 0.353553385 : f32
    %57 = vector.broadcast %cst_30 : f32 to vector<8x8xf32>
    %58 = arith.mulf %56, %57 : vector<8x8xf32>
    %cst_31 = arith.constant dense<0xFF800000> : vector<8xf32>
    %59 = vector.multi_reduction <maximumf>, %58, %cst_31 [1] : vector<8x8xf32> to vector<8xf32>
    %60 = vector.shape_cast %59 : vector<8xf32> to vector<8x1xf32>
    %61 = vector.broadcast %60 : vector<8x1xf32> to vector<8x8xf32>
    %62 = arith.subf %58, %61 : vector<8x8xf32>
    %63 = math.exp %62 : vector<8x8xf32>
    %cst_32 = arith.constant dense<0.000000e+00> : vector<8xf32>
    %64 = vector.multi_reduction <add>, %63, %cst_32 [1] : vector<8x8xf32> to vector<8xf32>
    %65 = vector.shape_cast %64 : vector<8xf32> to vector<8x1xf32>
    %66 = vector.broadcast %65 : vector<8x1xf32> to vector<8x8xf32>
    %67 = arith.divf %63, %66 : vector<8x8xf32>
    %c0_33 = arith.constant 0 : index
    %c1 = arith.constant 1 : index
    %c0_34 = arith.constant 0 : index
    %c0_35 = arith.constant 0 : index
    %68 = vector.load %arg8[%c0_33, %c1, %c0_34, %c0_35] : memref<1x4x8x8xf32, #tpu.memory_space<vmem>>, vector<1x1x8x8xf32>
    %69 = vector.shape_cast %68 : vector<1x1x8x8xf32> to vector<8x8xf32>
    %70 = vector.shape_cast %67 : vector<8x8xf32> to vector<1x1x8x8xf32>
    tpu.vector_store %arg8[%c0_33, %c1, %c0_34, %c0_35], %70 {strides = array<i32>} : memref<1x4x8x8xf32, #tpu.memory_space<vmem>>, vector<1x1x8x8xf32>,
    %cst_36 = arith.constant dense<0.000000e+00> : vector<8x8xf32>
    %71 = tpu.matmul %67, %55, %cst_36 {dimension_numbers = #tpu.dot_dimension_numbers<[1], [0], [0], [1], [0, 0, 1, 1], [], []>} : vector<8x8xf32>, vector<8x8xf32>, vector<8x8xf32> -> vector<8x8xf32>
    %72 = vector.extract_strided_slice %29 {offsets = [0, 16], sizes = [8, 8], strides = [1, 1]} : vector<8x32xf32> to vector<8x8xf32>
    %73 = vector.extract_strided_slice %31 {offsets = [0, 16], sizes = [8, 8], strides = [1, 1]} : vector<8x32xf32> to vector<8x8xf32>
    %74 = vector.extract_strided_slice %33 {offsets = [0, 16], sizes = [8, 8], strides = [1, 1]} : vector<8x32xf32> to vector<8x8xf32>
    %cst_37 = arith.constant dense<0.000000e+00> : vector<8x8xf32>
    %75 = tpu.matmul %72, %73, %cst_37 {dimension_numbers = #tpu.dot_dimension_numbers<[1], [1], [0], [0], [0, 0, 1, 0], [], []>} : vector<8x8xf32>, vector<8x8xf32>, vector<8x8xf32> -> vector<8x8xf32>
    %cst_38 = arith.constant 0.353553385 : f32
    %76 = vector.broadcast %cst_38 : f32 to vector<8x8xf32>
    %77 = arith.mulf %75, %76 : vector<8x8xf32>
    %cst_39 = arith.constant dense<0xFF800000> : vector<8xf32>
    %78 = vector.multi_reduction <maximumf>, %77, %cst_39 [1] : vector<8x8xf32> to vector<8xf32>
    %79 = vector.shape_cast %78 : vector<8xf32> to vector<8x1xf32>
    %80 = vector.broadcast %79 : vector<8x1xf32> to vector<8x8xf32>
    %81 = arith.subf %77, %80 : vector<8x8xf32>
    %82 = math.exp %81 : vector<8x8xf32>
    %cst_40 = arith.constant dense<0.000000e+00> : vector<8xf32>
    %83 = vector.multi_reduction <add>, %82, %cst_40 [1] : vector<8x8xf32> to vector<8xf32>
    %84 = vector.shape_cast %83 : vector<8xf32> to vector<8x1xf32>
    %85 = vector.broadcast %84 : vector<8x1xf32> to vector<8x8xf32>
    %86 = arith.divf %82, %85 : vector<8x8xf32>
    %c0_41 = arith.constant 0 : index
    %c2 = arith.constant 2 : index
    %c0_42 = arith.constant 0 : index
    %c0_43 = arith.constant 0 : index
    %87 = vector.load %arg8[%c0_41, %c2, %c0_42, %c0_43] : memref<1x4x8x8xf32, #tpu.memory_space<vmem>>, vector<1x1x8x8xf32>
    %88 = vector.shape_cast %87 : vector<1x1x8x8xf32> to vector<8x8xf32>
    %89 = vector.shape_cast %86 : vector<8x8xf32> to vector<1x1x8x8xf32>
    tpu.vector_store %arg8[%c0_41, %c2, %c0_42, %c0_43], %89 {strides = array<i32>} : memref<1x4x8x8xf32, #tpu.memory_space<vmem>>, vector<1x1x8x8xf32>,
    %cst_44 = arith.constant dense<0.000000e+00> : vector<8x8xf32>
    %90 = tpu.matmul %86, %74, %cst_44 {dimension_numbers = #tpu.dot_dimension_numbers<[1], [0], [0], [1], [0, 0, 1, 1], [], []>} : vector<8x8xf32>, vector<8x8xf32>, vector<8x8xf32> -> vector<8x8xf32>
    %91 = vector.extract_strided_slice %29 {offsets = [0, 24], sizes = [8, 8], strides = [1, 1]} : vector<8x32xf32> to vector<8x8xf32>
    %92 = vector.extract_strided_slice %31 {offsets = [0, 24], sizes = [8, 8], strides = [1, 1]} : vector<8x32xf32> to vector<8x8xf32>
    %93 = vector.extract_strided_slice %33 {offsets = [0, 24], sizes = [8, 8], strides = [1, 1]} : vector<8x32xf32> to vector<8x8xf32>
    %cst_45 = arith.constant dense<0.000000e+00> : vector<8x8xf32>
    %94 = tpu.matmul %91, %92, %cst_45 {dimension_numbers = #tpu.dot_dimension_numbers<[1], [1], [0], [0], [0, 0, 1, 0], [], []>} : vector<8x8xf32>, vector<8x8xf32>, vector<8x8xf32> -> vector<8x8xf32>
    %cst_46 = arith.constant 0.353553385 : f32
    %95 = vector.broadcast %cst_46 : f32 to vector<8x8xf32>
    %96 = arith.mulf %94, %95 : vector<8x8xf32>
    %cst_47 = arith.constant dense<0xFF800000> : vector<8xf32>
    %97 = vector.multi_reduction <maximumf>, %96, %cst_47 [1] : vector<8x8xf32> to vector<8xf32>
    %98 = vector.shape_cast %97 : vector<8xf32> to vector<8x1xf32>
    %99 = vector.broadcast %98 : vector<8x1xf32> to vector<8x8xf32>
    %100 = arith.subf %96, %99 : vector<8x8xf32>
    %101 = math.exp %100 : vector<8x8xf32>
    %cst_48 = arith.constant dense<0.000000e+00> : vector<8xf32>
    %102 = vector.multi_reduction <add>, %101, %cst_48 [1] : vector<8x8xf32> to vector<8xf32>
    %103 = vector.shape_cast %102 : vector<8xf32> to vector<8x1xf32>
    %104 = vector.broadcast %103 : vector<8x1xf32> to vector<8x8xf32>
    %105 = arith.divf %101, %104 : vector<8x8xf32>
    %c0_49 = arith.constant 0 : index
    %c3 = arith.constant 3 : index
    %c0_50 = arith.constant 0 : index
    %c0_51 = arith.constant 0 : index
    %106 = vector.load %arg8[%c0_49, %c3, %c0_50, %c0_51] : memref<1x4x8x8xf32, #tpu.memory_space<vmem>>, vector<1x1x8x8xf32>
    %107 = vector.shape_cast %106 : vector<1x1x8x8xf32> to vector<8x8xf32>
    %108 = vector.shape_cast %105 : vector<8x8xf32> to vector<1x1x8x8xf32>
    tpu.vector_store %arg8[%c0_49, %c3, %c0_50, %c0_51], %108 {strides = array<i32>} : memref<1x4x8x8xf32, #tpu.memory_space<vmem>>, vector<1x1x8x8xf32>,
    %cst_52 = arith.constant dense<0.000000e+00> : vector<8x8xf32>
    %109 = tpu.matmul %105, %93, %cst_52 {dimension_numbers = #tpu.dot_dimension_numbers<[1], [0], [0], [1], [0, 0, 1, 1], [], []>} : vector<8x8xf32>, vector<8x8xf32>, vector<8x8xf32> -> vector<8x8xf32>
    %110 = tpu.concatenate %52, %71, %90, %109 in 1 : vector<8x8xf32>, vector<8x8xf32>, vector<8x8xf32>, vector<8x8xf32> -> vector<8x32xf32>
    %111 = arith.addf %110, %1 : vector<8x32xf32>
    %c0_53 = arith.constant 0 : index
    %c0_54 = arith.constant 0 : index
    %c0_55 = arith.constant 0 : index
    %112 = vector.load %arg7[%c0_53, %c0_54, %c0_55] : memref<1x8x32xf32, #tpu.memory_space<vmem>>, vector<1x8x32xf32>
    %113 = vector.shape_cast %112 : vector<1x8x32xf32> to vector<8x32xf32>
    %114 = vector.shape_cast %111 : vector<8x32xf32> to vector<1x8x32xf32>
    tpu.vector_store %arg7[%c0_53, %c0_54, %c0_55], %114 {strides = array<i32>} : memref<1x8x32xf32, #tpu.memory_space<vmem>>, vector<1x8x32xf32>,
    return
  }
  func.func @transform_0(%arg0: i32) -> (i32, i32, i32) {
    %c0_i32 = arith.constant 0 : i32
    %c0_i32_0 = arith.constant 0 : i32
    %c0_i32_1 = arith.constant 0 : i32
    return %arg0, %c0_i32, %c0_i32_0 : i32, i32, i32
  }
  func.func @transform_1(%arg0: i32) -> (i32, i32) {
    %c0_i32 = arith.constant 0 : i32
    %c0_i32_0 = arith.constant 0 : i32
    %c0_i32_1 = arith.constant 0 : i32
    return %c0_i32, %c0_i32_0 : i32, i32
  }
  func.func @transform_2(%arg0: i32) -> (i32, i32) {
    %c0_i32 = arith.constant 0 : i32
    %c0_i32_0 = arith.constant 0 : i32
    %c0_i32_1 = arith.constant 0 : i32
    return %c0_i32, %c0_i32_0 : i32, i32
  }
  func.func @transform_3(%arg0: i32) -> (i32, i32) {
    %c0_i32 = arith.constant 0 : i32
    %c0_i32_0 = arith.constant 0 : i32
    %c0_i32_1 = arith.constant 0 : i32
    return %c0_i32, %c0_i32_0 : i32, i32
  }
  func.func @transform_4(%arg0: i32) -> (i32, i32) {
    %c0_i32 = arith.constant 0 : i32
    %c0_i32_0 = arith.constant 0 : i32
    %c0_i32_1 = arith.constant 0 : i32
    return %c0_i32, %c0_i32_0 : i32, i32
  }
  func.func @transform_5(%arg0: i32) -> (i32, i32) {
    %c0_i32 = arith.constant 0 : i32
    %c0_i32_0 = arith.constant 0 : i32
    %c0_i32_1 = arith.constant 0 : i32
    return %c0_i32, %c0_i32_0 : i32, i32
  }
  func.func @transform_6(%arg0: i32) -> (i32, i32, i32) {
    %c0_i32 = arith.constant 0 : i32
    %c0_i32_0 = arith.constant 0 : i32
    %c0_i32_1 = arith.constant 0 : i32
    return %arg0, %c0_i32, %c0_i32_0 : i32, i32, i32
  }
  func.func @transform_7(%arg0: i32) -> (i32, i32, i32, i32) {
    %c0_i32 = arith.constant 0 : i32
    %c0_i32_0 = arith.constant 0 : i32
    %c0_i32_1 = arith.constant 0 : i32
    %c0_i32_2 = arith.constant 0 : i32
    return %arg0, %c0_i32, %c0_i32_0, %c0_i32_1 : i32, i32, i32, i32
  }
}

</mosaic_0001>

<bundles_post_ra>
// kernel: tpu_custom_call.1
= control target key start
LH: loop header
LB: loop body
LE: loop exit
PB: predicated region body
PF: predicated region fallthrough
CT: control target
= control target key end

     0   :  { %13 = vsyncpa [#allocation3], 0  ;;  %s2417_s0 = inlined_call_operand.hbm [shape: f32[2,8,32], index: 0, kind: input, shape index: {}]   ;;  %s2418_s1 = inlined_call_operand.vmem [shape: f32[1,32], index: 1, kind: input, shape index: {}]   ;;  %s2419_s2 = inlined_call_operand.vmem [shape: f32[1,32], index: 2, kind: input, shape index: {}]   ;;  %s2420_s3 = inlined_call_operand.hbm [shape: f32[32,32], index: 3, kind: input, shape index: {}]   ;;  %s2421_s4 = inlined_call_operand.hbm [shape: f32[32,32], index: 4, kind: input, shape index: {}]   ;;  %s2422_s5 = inlined_call_operand.hbm [shape: f32[32,32], index: 5, kind: input, shape index: {}]   ;;  %s2423_s6 = inlined_call_operand.hbm [shape: f32[2,8,32], index: 6, kind: output, shape index: {0}]   ;;  %s2424_s7 = inlined_call_operand.hbm [shape: f32[2,4,8,8], index: 7, kind: output, shape index: {1}]  }
   0x1   :  { %15 = vsyncpa [#allocation3 + $0x1], 0 }
   0x2   :  { %16 = vsyncpa [#allocation6], 0 }
   0x3   :  { %17 = vsyncpa [#allocation9], 0 }
   0x4   :  { %18 = vsyncpa [#allocation4], 0 }
   0x5   :  { %20 = vsyncpa [#allocation4 + $0x1], 0 }
   0x6   :  { %21 = vsyncpa [#allocation12], 0 }
   0x7   :  { %23 = vsyncpa [#allocation12 + $0x1], 0  ;;  %s2019_s24 = smov 0   ;;  %s2021_s25 = smov 0  }
   0x8   :  { %s2023_s26 = smov 0   ;;  %s2025_s27 = smov 0  }
   0x9 LB: > { %s2040_s28 = sadd.s32 4294967295, %s1959_s27   ;;  %s1462_s29 = sadd.s32 4294967294, %s1959_s27   ;;  %s1959_s27 = sphi %s2025_s27, %s2450_s27   ;;  %s1955_s26 = sphi %s2023_s26, %s2449_s26   ;;  %s1951_s25 = sphi %s2021_s25, %s2448_s25   ;;  %s1947_s24 = sphi %s2019_s24, %s2447_s24  }
   0xa   : > { %p49_p0 = scmp.ne.s32.totalorder %s1951_s25, %s1947_s24  ;;  %p2425_p1 = scmp.eq.s32.totalorder %s2040_s28, 0 }
   0xb   : > { %p184_p3 = scmp.eq.s32.totalorder %s1462_s29, 1  ;;  %p1463_p5 = scmp.ge.s32.totalorder %s1959_s27, 1 }
   0xc   : > { %p2049_p4 = por %p2425_p1, %p49_p0  ;;  %p217_p7 = scmp.lt.s32.totalorder %s1959_s27, 3 }
   0xd   : > { %p2054_p6 = por %p184_p3, %p49_p0  ;;  %s1961_s10 = smov [#allocation5]  }
   0xe   : > { %s2429_s30 = scalar_select %p2049_p4, 1, 0 }
   0xf   : > { %s2430_s8 = scalar_select %p2054_p6, 1, 0 }
  0x10   : > { %p2059_p8 = pnand %p1463_p5, %p217_p7  ;;  %s235_s11 = sshll.u32 %s1961_s10, 4  ;;  %s2063_s11 = int_to_ptr.vmem [resolvable:$true] %s235_s11 }
  0x11   : > { %2431 = sst [smem:[#allocation18_spill]] %s2430_s8  ;;  %s1962_s13 = smov [#allocation7]  }
  0x12   : > { %s2432_s9 = scalar_select %p2059_p8, 1, 0 }
  0x13   : > { %p1645_p9 = pneg %p2059_p8  ;;  %s248_s14 = sshll.u32 %s1962_s13, 4  ;;  %s2074_s14 = int_to_ptr.vmem [resolvable:$true] %s248_s14 }
  0x14   : > { %s1963_s15 = smov [#allocation8]   ;;  %s1739_s19 = scalar_lea.hbm %s2420_s3, 512 }
  0x15   : > { %p2070_p11 = pnand %p1645_p9, %p2425_p1  ;;  %s2076_s16 = sshll.u32 %s1963_s15, 4  ;;  %s262_s16 = int_to_ptr.vmem [resolvable:$true] %s2076_s16 }
  0x16   : > { %p1740_p12 = scmp.ne.s32.totalorder %s2420_s3, %s1739_s19  ;;  %p1746_p5 = scmp.lt.u32.totalorder %s1739_s19, %s2420_s3 }
  0x17   : > { %p2086_p13 = pneg %p2070_p11 }
  0x19   : > { %p1742_p0 = pnand %p2086_p13, %p1740_p12 }
  0x1b   : > { %p1743_p3 = pneg %p1742_p0 }
  0x1d   : > { %p1748_p7 = pnand %p1746_p5, %p1743_p3 }
  0x1f   : > { %1751 = shalt.err (!%p1748_p7)
}
  0x20   : > { %s1752_s10 = scalar_lea.vmem %s2063_s11, 512  ;;  %p1760_p2 = scmp.lt.s32.totalorder %s2063_s11, %s2063_s11 }
  0x21   : > { %p1753_p9 = scmp.ne.s32.totalorder %s2063_s11, %s1752_s10  ;;  %p1761_p6 = scmp.lt.s32.totalorder %s1752_s10, %s1752_s10 }
  0x23   : > { %p1755_p10 = pnand %p1753_p9, %p2086_p13  ;;  %p1762_p12 = por %p1761_p6, %p1760_p2 }
  0x25   : > { %p1756_p1 = pneg %p1755_p10 }
  0x27   : > { %p1763_p0 = pnand %p1762_p12, %p1756_p1 }
  0x29   : > { %1766 = shalt.err (!%p1763_p0)
}
  0x2a   : > { %s1964_s13 = smov 128   ;;  %s1965_s15 = smov 8  }
  0x2b   : > { %1648 = dma.hbm_to_vmem [thread:$0]  (!%p2070_p11), %s2420_s3, 512, %s2063_s11, [#allocation6], %s1964_s13, %s1964_s13, %s1965_s15  }
  0x2c   : > { %s1767_s21 = scalar_lea.hbm %s2421_s4, 512 }
  0x2d   : > { %p1768_p1 = scmp.ne.s32.totalorder %s2421_s4, %s1767_s21  ;;  %p1774_p10 = scmp.lt.u32.totalorder %s1767_s21, %s2421_s4 }
  0x2f   : > { %p1770_p2 = pnand %p1768_p1, %p2086_p13 }
  0x31   : > { %p1771_p6 = pneg %p1770_p2 }
  0x33   : > { %p1776_p3 = pnand %p1774_p10, %p1771_p6 }
  0x35   : > { %1779 = shalt.err (!%p1776_p3)
}
  0x36   : > { %s1780_s11 = scalar_lea.vmem %s2074_s14, 512  ;;  %p1788_p12 = scmp.lt.s32.totalorder %s2074_s14, %s2074_s14 }
  0x37   : > { %p1781_p5 = scmp.ne.s32.totalorder %s2074_s14, %s1780_s11  ;;  %p1789_p0 = scmp.lt.s32.totalorder %s1780_s11, %s1780_s11 }
  0x39   : > { %p1783_p7 = pnand %p1781_p5, %p2086_p13  ;;  %p1790_p1 = por %p1789_p0, %p1788_p12 }
  0x3b   : > { %p1784_p9 = pneg %p1783_p7 }
  0x3d   : > { %p1791_p2 = pnand %p1790_p1, %p1784_p9 }
  0x3f   : > { %1794 = shalt.err (!%p1791_p2)
}
  0x40   : > { %1651 = dma.hbm_to_vmem [thread:$0]  (!%p2070_p11), %s2421_s4, 512, %s2074_s14, [#allocation6], %s1964_s13, %s1964_s13, %s1965_s15  }
  0x41   : > { %s1795_s20 = scalar_lea.hbm %s2422_s5, 512 }
  0x42   : > { %p1796_p6 = scmp.ne.s32.totalorder %s2422_s5, %s1795_s20  ;;  %p1802_p5 = scmp.lt.u32.totalorder %s1795_s20, %s2422_s5 }
  0x44   : > { %p1798_p10 = pnand %p1796_p6, %p2086_p13 }
  0x46   : > { %p1799_p3 = pneg %p1798_p10 }
  0x48   : > { %p1804_p7 = pnand %p1802_p5, %p1799_p3 }
  0x4a   : > { %1807 = shalt.err (!%p1804_p7)
}
  0x4b   : > { %s1808_s11 = scalar_lea.vmem %s262_s16, 512  ;;  %p1816_p1 = scmp.lt.s32.totalorder %s262_s16, %s262_s16 }
  0x4c   : > { %p1809_p9 = scmp.ne.s32.totalorder %s262_s16, %s1808_s11  ;;  %p1817_p2 = scmp.lt.s32.totalorder %s1808_s11, %s1808_s11 }
  0x4e   : > { %p1811_p12 = pnand %p1809_p9, %p2086_p13  ;;  %p1818_p4 = por %p1817_p2, %p1816_p1 }
  0x50   : > { %p1812_p0 = pneg %p1811_p12 }
  0x52   : > { %p1819_p8 = pnand %p1818_p4, %p1812_p0 }
  0x54   : > { %1822 = shalt.err (!%p1819_p8)
}
  0x55   : > { %1654 = dma.hbm_to_vmem [thread:$0]  (!%p2070_p11), %s2422_s5, 512, %s262_s16, [#allocation9], %s1964_s13, %s1964_s13, %s1965_s15  }
  0x56   : > { %s2159_s22 = sadd.s32 1, %s1959_s27   ;;  %s36_s17 = sadd.s32 1, %s1955_s26 }
  0x57   : > { %s33_s12 = ssub.s32 %s1959_s27, %s2159_s22  ;;  %p43_p8 = scmp.ne.s32.totalorder %s1955_s26, %s1951_s25 }
  0x58   : > { %p34_p4 = scmp.eq.s32.totalorder %s33_s12, 0  ;;  %p44_p13 = scmp.eq.s32.totalorder %s1959_s27, 0 }
  0x59   : > { %p1669_p6 = scmp.lt.s32.totalorder %s1959_s27, 2  ;;  %p2435_p3 = scmp.eq.s32.totalorder %s2040_s28, 1 }
  0x5a   : > { %s2169_s18 = scalar_select %p34_p4, %s1955_s26, %s36_s17  }
  0x5b   : > { %p45_p10 = por %p44_p13, %p43_p8  ;;  %p2173_p5 = por %p2435_p3, %p43_p8 }
  0x5c   : > { %s275_s20 = sand.u32 1, %s1955_s26   ;;  %s1469_s21 = sshll.u32 %s1959_s27, 7 }
  0x5d   : > { %s1468_s16 = sshll.u32 %s275_s20, 3  ;;  %s2182_s23 = scalar_lea.hbm %s2417_s0, %s1469_s21 }
  0x5e   : > { %s279_s29 = scalar_lea.vmem [#allocation2], %s1468_s16  ;;  %p2184_p11 = pnand %p1669_p6, %p45_p10 }
  0x5f   : > { %s286_s10 = sshll.u32 %s279_s29, 4  ;;  %s276_s14 = scalar_lea.sflag [#allocation3], %s275_s20  ;;  %s2188_s10 = int_to_ptr.vmem [resolvable:$true] %s286_s10 }
  0x60   : > { %s1823_s8 = scalar_lea.hbm %s2182_s23, 128  ;;  %p1825_p9 = pneg %p2184_p11 }
  0x61   : > { %p1824_p7 = scmp.ne.s32.totalorder %s2182_s23, %s1823_s8  ;;  %s1828_s21 = scalar_lea.hbm %s2417_s0, 256 }
  0x62   : > { %p1829_p1 = scmp.lt.u32.totalorder %s2182_s23, %s2417_s0  ;;  %p1830_p2 = scmp.lt.u32.totalorder %s1828_s21, %s1823_s8 }
  0x63   : > { %p1826_p12 = pnand %p1825_p9, %p1824_p7  ;;  %p1832_p8 = scmp.lt.u32.totalorder %s1823_s8, %s2182_s23 }
  0x64   : > { %p1831_p4 = por %p1830_p2, %p1829_p1 }
  0x65   : > { %p1827_p0 = pneg %p1826_p12 }
  0x66   : > { %p1833_p13 = por %p1832_p8, %p1831_p4 }
  0x68   : > { %p1834_p6 = pnand %p1833_p13, %p1827_p0 }
  0x6a   : > { %1837 = shalt.err (!%p1834_p6)
}
  0x6b   : > { %s1838_s20 = scalar_lea.vmem %s2188_s10, 128  ;;  %s1966_s15 = smov [#allocation2]  }
  0x6c   : > { %p1839_p10 = scmp.ne.s32.totalorder %s2188_s10, %s1838_s20  ;;  %s1843_s29 = sshll.u32 %s1966_s15, 4  ;;  %s1844_s29 = int_to_ptr.vmem [resolvable:$false] %s1843_s29 }
  0x6d   : > { %s1845_s12 = scalar_lea.vmem %s1844_s29, 256  ;;  %p1846_p12 = scmp.lt.s32.totalorder %s2188_s10, %s1844_s29 }
  0x6e   : > { %p1841_p3 = pnand %p1839_p10, %p1825_p9  ;;  %p1847_p1 = scmp.lt.s32.totalorder %s1845_s12, %s1838_s20 }
  0x70   : > { %p1842_p7 = pneg %p1841_p3  ;;  %p1848_p2 = por %p1847_p1, %p1846_p12 }
  0x72   : > { %p1849_p4 = pnand %p1848_p2, %p1842_p7 }
  0x74   : > { %1852 = shalt.err (!%p1849_p4)
}
  0x75   : > { %1658 = dma.hbm_to_vmem [thread:$0]  (!%p2184_p11), %s2182_s23, 128, %s2188_s10, %s276_s14  }
  0x76   : > { %p2438_p0 = scmp.ne.s32.totalorder %s2432_s9, 0 }
  0x77   : > { %s2218_s8 = sand.u32 (!%p2438_p0), 1, %s1951_s25   ;;  %p2439_p9 = scmp.ne.s32.totalorder (!%p2438_p0), %s2429_s30, 0 }
  0x78   : > { %295 = sbr.rel (%p2438_p0) target bundleno = 1564 (0x61c), region = 44  ;;  %s1471_s17 = sshll.u32 (!%p2438_p0), %s2218_s8, 3 }
  0x79   : > { %s298_s21 = scalar_lea.sflag (!%p2438_p0), [#allocation3], %s2218_s8  ;;  %s301_s16 = scalar_lea.vmem (!%p2438_p0), [#allocation2], %s1471_s17 }
  0x7f   : > { %1926 = dma.done.wait (%p2439_p9), %s298_s21, 128  }
  0x80   : > { %1928 = vsyncadd (%p2439_p9), %s298_s21, 4294967168  ;;  %p2440_p11 = scmp.eq.s32.totalorder %s2040_s28, 0 }
  0x82   : > { %1930 = dma.done.wait (%p2440_p11), [#allocation6], 1024   ;;  %p2441_p8 = pmov %p2440_p11 }
  0x84   : > { %1932 = vsyncadd (%p2441_p8), [#allocation6], 4294966272  ;;  %p2442_p13 = pmov %p2441_p8 }
  0x85   : > { %p2443_p6 = pmov %p2441_p8 }
  0x86   : > { %1934 = dma.done.wait (%p2442_p13), [#allocation9], 512  }
  0x87   : > { %1936 = vsyncadd (%p2443_p6), [#allocation9], 4294966784  ;;  %vm350_vm0 = vcmask 261120   ;;  %v2236_v0 = vld [vmem:[%s301_s16] sm:$0xff]  ;;  %v384_v4 = vld [vmem:[#allocation5] sm:$0xff]  ;;  %v1967_v7 = vmov 0.0|0.0  }
  0x88   : > { %v351_v1 = vsel %vm350_vm0, %v2236_v0, 0.0  ;;  %v356_v2 = vmul.f32 %v2236_v0, %v2236_v0  ;;  %v385_v5 = vld [vmem:[#allocation5 + $0x8] sm:$0xff]  ;;  %v461_v6 = vld [vmem:[#allocation7] sm:$0xff]  ;;  %1609 = vmatprep.subr.bf16.mxu0 %v1967_v7  ;;  %1615 = vmatprep.subr.bf16.mxu1 %v1967_v7  ;;  %v386_v10 = vld [vmem:[#allocation5 + $0x10] sm:$0xff]  ;;  %vm1968_vm1 = vmmov 0   ;;  %v1969_v15 = vmov 0.0  }
  0x89   : > { %352 = vadd.xlane.f32.xlu0 %v351_v1  ;;  %v1610_v8 = vpack.c.bf16 %v385_v5, %v384_v4  ;;  %v462_v9 = vld [vmem:[#allocation7 + $0x8] sm:$0xff]  ;;  %v387_v11 = vld [vmem:[#allocation5 + $0x18] sm:$0xff]  ;;  %v463_v13 = vld [vmem:[#allocation7 + $0x10] sm:$0xff]  ;;  %1544 = vmatprep.mubr.msk.f32.mxu0 %vm1968_vm1, %v1969_v15  ;;  %vm609_vm2 = vcmask 64512   ;;  %s1970_s11 = smov 112   ;;  %s1971_s14 = smov 120  }
  0x8a   : > { %v357_v3 = vsel %vm350_vm0, %v356_v2, 0.0  ;;  %v1616_v12 = vpack.c.bf16 %v462_v9, %v461_v6  ;;  %v464_v14 = vld [vmem:[#allocation7 + $0x18] sm:$0xff]  ;;  %1555 = vmatprep.mubr.msk.f32.mxu1 %vm1968_vm1, %v1969_v15  ;;  %v1613_v16 = vpack.c.bf16 %v387_v11, %v386_v10  ;;  %v1477_v28 = vld [vmem:[%s2418_s1] ss:$0 sm:$0xff]  ;;  %v535_v30 = vld [vmem:[#allocation8] sm:$0xff]  ;;  %s1972_s13 = smov 104  }
  0x8b   : > { %1611 = vmatpush3.bf16.msra.mxu0 %v1610_v8  ;;  %v1619_v17 = vpack.c.bf16 %v464_v14, %v463_v13  ;;  %v536_v31 = vld [vmem:[#allocation8 + $0x8] sm:$0xff]  ;;  %v1478_v32 = vld [vmem:[%s2419_s2] ss:$0 sm:$0xff]  ;;  %v538_v37 = vld [vmem:[#allocation8 + $0x18] sm:$0xff]  ;;  %s1476_s20 = sshll.u32 %s2218_s8, 5  ;;  %s1973_s29 = smov 8  }
  0x8c   : > { %1617 = vmatpush3.bf16.msra.mxu1 %v1616_v12  ;;  %1612 = vmatprep.subr.bf16.mxu0 %v1967_v7  ;;  %v1622_v34 = vpack.c.bf16 %v536_v31, %v535_v30  ;;  %v537_v36 = vld [vmem:[#allocation8 + $0x10] sm:$0xff]  ;;  %s2304_s15 = scalar_lea.vmem [#allocation11], %s1476_s20  ;;  %s1974_s12 = smov 16  }
  0x8d   : > { %358 = vadd.xlane.f32.xlu0 %v357_v3  ;;  %1618 = vmatprep.subr.bf16.mxu1 %v1967_v7  ;;  %v1625_v38 = vpack.c.bf16 %v538_v37, %v537_v36  ;;  %s1504_s21 = sshll.u32 %s2040_s28, 9  ;;  %s1328_s16 = sshll.u32 %s2304_s15, 4  ;;  %s2337_s16 = int_to_ptr.vmem [resolvable:$true] %s1328_s16 }
  0x8e   : > { %s2335_s23 = scalar_lea.hbm %s2424_s7, %s1504_s21  ;;  %s1302_s10 = scalar_lea.sflag [#allocation12], %s2218_s8 }
  0x8f   : > { %1614 = vmatpush3.bf16.msra.mxu0 %v1613_v16 }
  0x90   : > { %1620 = vmatpush3.bf16.msra.mxu1 %v1619_v17  ;;  %1621 = vmatprep.subr.bf16.mxu0 %v1967_v7 }
  0x91   : > { %1569 = vmatprep.subr.mxu1 %v1969_v15 }
 0x116   : > { %v353_v18 = vpop.xlane.xlu0 %352 }
 0x117   : > { %v355_v19 = vmul.f32 0.03125, %v353_v18 }
 0x119   : > { %v361_v21 = vmul.f32 %v355_v19, %v355_v19  ;;  %v364_v26 = vsub.f32 %v2236_v0, %v355_v19 }
 0x11a   : > { %v359_v20 = vpop.xlane.xlu0 %358 }
 0x11b   : > { %v360_v22 = vmul.f32 0.03125, %v359_v20 }
 0x11d   : > { %v362_v23 = vsub.f32 %v360_v22, %v361_v21 }
 0x11f   : > { %v363_v24 = vmax.f32 %v362_v23, 0.0 }
 0x121   : > { %v365_v25 = vadd.f32 1e-05, %v363_v24 }
 0x123   : > { %1721 = vrsqrt.f32 %v365_v25 }
 0x12d   : > { %v1722_v27 = vpop.eup %1721 }
 0x12e   : > { %v367_v29 = vmul.f32 %v1722_v27, %v364_v26 }
 0x130   : > { %v375_v33 = vmul.f32 %v1477_v28, %v367_v29 }
 0x132   : > { %v383_v35 = vadd.f32 %v1478_v32, %v375_v33 }
 0x134   : > { %1545 = vmatmul.mubr.msk.f32.vlgmr.msra.gmra.mrb[0].mxu0 %vm350_vm0, %v383_v35  ;;  %1556 = vmatmul.mubr.msk.f32.vlgmr.msra.gmra.mrb[0].mxu1 %vm350_vm0, %v383_v35 }
 0x135   : > { %1623 = vmatpush3.bf16.msra.mxu0 %v1622_v34  ;;  %1566 = vmatprep.mubr.msk.f32.mxu0 %vm1968_vm1, %v1969_v15 }
 0x136   : > { %1624 = vmatprep.subr.bf16.mxu0 %v1967_v7  ;;  %1571 = vmatprep.mubr.msk.f32.mxu1 %vm1968_vm1, %v1969_v15 }
 0x139   : > { %1626 = vmatpush3.bf16.msra.mxu0 %v1625_v38 }
 0x13a   : > { %1579 = vmatprep.subr.mxu0 %v1969_v15 }
 0x13c   : > { %1567 = vmatmul.mubr.msk.f32.vlgmr.msra.gmra.mrb[2].mxu0 %vm350_vm0, %v383_v35 }
 0x13d   : > { %1581 = vmatprep.mubr.msk.f32.mxu0 %vm1968_vm1, %v1969_v15 }
 0x207   : > { %v457_v39 = vpop.f32.mrb[0].mxu0  ;;  %v531_v40 = vpop.f32.mrb[0].mxu1 }
 0x208   : > { %943 = vrot.lane.b32.xlu0 %v531_v40, %s1970_s11  ;;  %774 = vrot.lane.b32.xlu1 %v531_v40, %s1971_s14  ;;  %v1546_v41 = vpop.f32.mrb[1].mxu0  ;;  %v1557_v42 = vpop.f32.mrb[1].mxu1 }
 0x209   : > { %1570 = vmatpush3.xpose.msk.msra.mxu1 %vm609_vm2, %v531_v40 }
 0x20a   : > { %1574 = vmatprep.subr.mxu1 %v1969_v15 }
 0x20c   : > { %1572 = vmatmul.mubr.msk.f32.vlgmr.msra.gmra.mrb[2].mxu1 %vm609_vm2, %v457_v39  ;;  %772 = vrot.lane.b32.xlu1 %v457_v39, %s1971_s14 }
 0x20d   : > { %1576 = vmatprep.mubr.msk.f32.mxu1 %vm1968_vm1, %v1969_v15 }
 0x20f   : > { %v2273_v43 = vpop.f32.mrb[2].mxu0 }
 0x210   : > { %v1568_v44 = vpop.f32.mrb[3].mxu0  ;;  %1575 = vmatpush3.msra.mxu1 %v2273_v43  ;;  %941 = vrot.lane.b32.xlu1 %v457_v39, %s1970_s11 }
 0x211   : > { %1584 = vmatprep.subr.mxu1 %v1969_v15 }
 0x214   : > { %1111 = vrot.lane.b32.xlu1 %v531_v40, %s1972_s13 }
 0x218   : > { %1109 = vrot.lane.b32.xlu1 %v457_v39, %s1972_s13 }
 0x27a   : > { %v775_v45 = vpop.permute.xlu1 %774  ;;  %v944_v47 = vpop.permute.xlu0 %943 }
 0x27b   : > { %1580 = vmatpush3.xpose.msk.msra.mxu0 %vm609_vm2, %v775_v45 }
 0x27c   : > { %1589 = vmatprep.subr.mxu0 %v1969_v15 }
 0x27e   : > { %v773_v46 = vpop.permute.xlu1 %772 }
 0x27f   : > { %1582 = vmatmul.mubr.msk.f32.vlgmr.msra.gmra.mrb[4].mxu0 %vm609_vm2, %v773_v46 }
 0x280   : > { %1590 = vmatpush3.xpose.msk.msra.mxu0 %vm609_vm2, %v944_v47  ;;  %1591 = vmatprep.mubr.msk.f32.mxu0 %vm1968_vm1, %v1969_v15 }
 0x281   : > { %1599 = vmatprep.subr.mxu0 %v1969_v15 }
 0x282   : > { %v942_v48 = vpop.permute.xlu1 %941 }
 0x283   : > { %1592 = vmatmul.mubr.msk.f32.vlgmr.msra.gmra.mrb[6].mxu0 %vm609_vm2, %v942_v48 }
 0x284   : > { %1601 = vmatprep.mubr.msk.f32.mxu0 %vm1968_vm1, %v1969_v15 }
 0x286   : > { %v1112_v49 = vpop.permute.xlu1 %1111 }
 0x287   : > { %1600 = vmatpush3.xpose.msk.msra.mxu0 %vm609_vm2, %v1112_v49 }
 0x28a   : > { %v1110_v50 = vpop.permute.xlu1 %1109 }
 0x28b   : > { %1602 = vmatmul.mubr.msk.f32.vlgmr.msra.gmra.mrb[8].mxu0 %vm609_vm2, %v1110_v50 }
 0x2df   : > { %v682_v51 = vpop.f32.mrb[2].mxu1 }
 0x2e0   : > { %v686_v52 = vmul.f32 0.35355338, %v682_v51  ;;  %v1573_v53 = vpop.f32.mrb[3].mxu1 }
 0x2e2   : > { %v687_v54 = vsel %vm609_vm2, %v686_v52, -inf }
 0x2e3   : > { %688 = vmax.xlane.f32.xlu1 %v687_v54 }
 0x352   : > { %v846_v55 = vpop.f32.mrb[4].mxu0 }
 0x353   : > { %v850_v56 = vmul.f32 0.35355338, %v846_v55  ;;  %v1583_v57 = vpop.f32.mrb[5].mxu0 }
 0x355   : > { %v851_v58 = vsel %vm609_vm2, %v850_v56, -inf }
 0x356   : > { %852 = vmax.xlane.f32.xlu0 %v851_v58  ;;  %v1015_v59 = vpop.f32.mrb[6].mxu0 }
 0x357   : > { %v1019_v60 = vmul.f32 0.35355338, %v1015_v59  ;;  %v1593_v61 = vpop.f32.mrb[7].mxu0 }
 0x359   : > { %v1020_v62 = vsel %vm609_vm2, %v1019_v60, -inf }
 0x35a   : > { %1021 = vmax.xlane.f32.xlu1 %v1020_v62 }
 0x35e   : > { %v1183_v63 = vpop.f32.mrb[8].mxu0 }
 0x35f   : > { %v1187_v1 = vmul.f32 0.35355338, %v1183_v63  ;;  %v1603_v2 = vpop.f32.mrb[9].mxu0 }
 0x361   : > { %v1188_v3 = vsel %vm609_vm2, %v1187_v1, -inf }
 0x362   : > { %1189 = vmax.xlane.f32.xlu1 %v1188_v3 }
 0x370   : > { %v689_v4 = vpop.xlane.xlu1 %688 }
 0x371   : > { %v690_v5 = vsub.f32 %v686_v52, %v689_v4 }
 0x373   : > { %v691_v6 = vmul.f32 1.442695, %v690_v5 }
 0x375   : > { %1723 = vpow2.f32 %v691_v6 }
 0x37f   : > { %v1724_v7 = vpop.eup %1723 }
 0x380   : > { %v693_v8 = vsel %vm609_vm2, %v1724_v7, 0.0 }
 0x381   : > { %694 = vadd.xlane.f32.xlu0 %v693_v8 }
 0x3e3   : > { %v853_v9 = vpop.xlane.xlu0 %852 }
 0x3e4   : > { %v854_v10 = vsub.f32 %v850_v56, %v853_v9 }
 0x3e6   : > { %v855_v11 = vmul.f32 1.442695, %v854_v10 }
 0x3e7   : > { %v1022_v12 = vpop.xlane.xlu1 %1021 }
 0x3e8   : > { %1725 = vpow2.f32 %v855_v11  ;;  %v1023_v13 = vsub.f32 %v1019_v60, %v1022_v12 }
 0x3ea   : > { %v1024_v14 = vmul.f32 1.442695, %v1023_v13 }
 0x3ec   : > { %1727 = vpow2.f32 %v1024_v14 }
 0x3ef   : > { %v1190_v21 = vpop.xlane.xlu1 %1189 }
 0x3f0   : > { %v1191_v22 = vsub.f32 %v1187_v1, %v1190_v21 }
 0x3f2   : > { %v1726_v16 = vpop.eup %1725  ;;  %v1192_v23 = vmul.f32 1.442695, %v1191_v22 }
 0x3f3   : > { %v857_v17 = vsel %vm609_vm2, %v1726_v16, 0.0 }
 0x3f4   : > { %858 = vadd.xlane.f32.xlu1 %v857_v17 }
 0x3f6   : > { %v1728_v18 = vpop.eup %1727 }
 0x3f7   : > { %v1026_v19 = vsel %vm609_vm2, %v1728_v18, 0.0 }
 0x3f8   : > { %1027 = vadd.xlane.f32.xlu0 %v1026_v19 }
 0x405   : > { %1033 = vrot.lane.b32.xlu1 %v2273_v43, %s1970_s11  ;;  %s1853_s11 = scalar_lea.vmem %s2337_s16, 512 }
 0x406   : > { %p1854_p10 = scmp.ne.s32.totalorder %s2337_s16, %s1853_s11 }
 0x408   : > { %p1855_p3 = pnand %p1854_p10, %p2173_p5 }
 0x40a   : > { %p1856_p7 = pneg %p1855_p3 }
 0x40e   : > { %v695_v20 = vpop.xlane.xlu0 %694  ;;  %865 = vrot.lane.b32.xlu0 %v2273_v43, %s1971_s14  ;;  %s1975_s14 = smov [#allocation11]  }
 0x40f   : > { %1729 = vrcp.f32 %v695_v20 }
 0x410   : > { %1731 = vpow2.f32 %v1192_v23 }
 0x419   : > { %v1730_v24 = vpop.eup %1729 }
 0x41a   : > { %v697_v25 = vmul.f32 %v1730_v24, %v1724_v7  ;;  %v1732_v26 = vpop.eup %1731 }
 0x41b   : > { %v1194_v27 = vsel %vm609_vm2, %v1732_v26, 0.0 }
 0x41c   : > { %698 = vst.msk [vmem:[%s2304_s15] sm:$0xff] %vm609_vm2, %v697_v25  ;;  %1577 = vmatmul.mubr.msk.f32.vlgmr.msra.gmra.mrb[4].mxu1 %vm609_vm2, %v697_v25 }
 0x41d   : > { %1586 = vmatprep.mubr.msk.f32.mxu1 %vm1968_vm1, %v1969_v15 }
 0x429   : > { %1195 = vadd.xlane.f32.xlu1 %v1194_v27 }
 0x43a   : > { %1201 = vrot.lane.b32.xlu1 %v2273_v43, %s1972_s13  ;;  %s1857_s13 = sshll.u32 %s1975_s14, 4  ;;  %s1858_s13 = int_to_ptr.vmem [resolvable:$false] %s1857_s13 }
 0x43b   : > { %s1859_s20 = scalar_lea.vmem %s1858_s13, 1024  ;;  %p1860_p12 = scmp.lt.s32.totalorder %s2337_s16, %s1858_s13 }
 0x43c   : > { %p1861_p1 = scmp.lt.s32.totalorder %s1859_s20, %s1853_s11 }
 0x43e   : > { %p1862_p2 = por %p1861_p1, %p1860_p12 }
 0x440   : > { %p1863_p4 = pnand %p1862_p2, %p1856_p7 }
 0x481   : > { %v859_v28 = vpop.xlane.xlu1 %858 }
 0x482   : > { %1733 = vrcp.f32 %v859_v28 }
 0x485   : > { %v1028_v29 = vpop.xlane.xlu0 %1027  ;;  %v1034_v33 = vpop.permute.xlu1 %1033 }
 0x486   : > { %1735 = vrcp.f32 %v1028_v29 }
 0x489   : > { %v866_v30 = vpop.permute.xlu0 %865 }
 0x48a   : > { %1585 = vmatpush3.msra.mxu1 %v866_v30 }
 0x48b   : > { %1594 = vmatprep.subr.mxu1 %v1969_v15 }
 0x48c   : > { %v1734_v31 = vpop.eup %1733 }
 0x48d   : > { %v861_v32 = vmul.f32 %v1734_v31, %v1726_v16 }
 0x48f   : > { %1487 = vst.msk [vmem:[%s2304_s15 + $0x8] sm:$0xff] %vm609_vm2, %v861_v32  ;;  %1587 = vmatmul.mubr.msk.f32.vlgmr.msra.gmra.mrb[6].mxu1 %vm609_vm2, %v861_v32 }
 0x490   : > { %v1736_v34 = vpop.eup %1735  ;;  %1595 = vmatpush3.msra.mxu1 %v1034_v33  ;;  %1596 = vmatprep.mubr.msk.f32.mxu1 %vm1968_vm1, %v1969_v15 }
 0x491   : > { %v1030_v35 = vmul.f32 %v1736_v34, %v1728_v18  ;;  %1604 = vmatprep.subr.mxu1 %v1969_v15 }
 0x493   : > { %1491 = vst.msk [vmem:[%s2304_s15 + $0x10] sm:$0xff] %vm609_vm2, %v1030_v35  ;;  %1597 = vmatmul.mubr.msk.f32.vlgmr.msra.gmra.mrb[8].mxu1 %vm609_vm2, %v1030_v35 }
 0x494   : > { %1606 = vmatprep.mubr.msk.f32.mxu1 %vm1968_vm1, %v1969_v15 }
 0x4b6   : > { %v1196_v36 = vpop.xlane.xlu1 %1195 }
 0x4b7   : > { %1737 = vrcp.f32 %v1196_v36 }
 0x4ba   : > { %v1202_v37 = vpop.permute.xlu1 %1201 }
 0x4bb   : > { %1605 = vmatpush3.msra.mxu1 %v1202_v37 }
 0x4c1   : > { %v1738_v38 = vpop.eup %1737 }
 0x4c2   : > { %v1198_v39 = vmul.f32 %v1738_v38, %v1732_v26 }
 0x4c4   : > { %1495 = vst.msk [vmem:[%s2304_s15 + $0x18] sm:$0xff] %vm609_vm2, %v1198_v39  ;;  %1607 = vmatmul.mubr.msk.f32.vlgmr.msra.gmra.mrb[10].mxu1 %vm609_vm2, %v1198_v39 }
 0x4ef   : > { %v768_v40 = vpop.f32.mrb[4].mxu1 }
 0x4f0   : > { %v1578_v41 = vpop.f32.mrb[5].mxu1 }
 0x562   : > { %v937_v42 = vpop.f32.mrb[6].mxu1 }
 0x563   : > { %1278 = vrot.lane.b32.xlu0 %v937_v42, %s1973_s29  ;;  %v1588_v15 = vpop.f32.mrb[7].mxu1 }
 0x566   : > { %v1105_v43 = vpop.f32.mrb[8].mxu1 }
 0x567   : > { %1282 = vrot.lane.b32.xlu1 %v1105_v43, %s1974_s12  ;;  %v1598_v44 = vpop.f32.mrb[9].mxu1 }
 0x568   : > { %1866 = shalt.err (!%p1863_p4)
}
 0x569   : > { %s1867_s15 = scalar_lea.hbm %s2335_s23, 512  ;;  %s1871_s30 = scalar_lea.hbm %s2424_s7, 1024 }
 0x56a   : > { %p1868_p0 = scmp.ne.s32.totalorder %s2335_s23, %s1867_s15  ;;  %p1872_p8 = scmp.lt.u32.totalorder %s2335_s23, %s2424_s7 }
 0x56b   : > { %p1873_p13 = scmp.lt.u32.totalorder %s1871_s30, %s1867_s15  ;;  %p1875_p10 = scmp.lt.u32.totalorder %s1867_s15, %s2335_s23 }
 0x56c   : > { %p1869_p9 = pnand %p1868_p0, %p2173_p5 }
 0x56d   : > { %p1874_p6 = por %p1873_p13, %p1872_p8 }
 0x56e   : > { %p1870_p11 = pneg %p1869_p9 }
 0x56f   : > { %p1876_p3 = por %p1875_p10, %p1874_p6 }
 0x571   : > { %p1877_p7 = pnand %p1876_p3, %p1870_p11 }
 0x573   : > { %1880 = shalt.err (!%p1877_p7)
}
 0x574   : > { %s1976_s11 = smov 128   ;;  %s1977_s13 = smov 24   ;;  %vm1290_vm3 = vcmask 130048   ;;  %vm1292_vm4 = vcmask 195584  }
 0x575   : > { %1642 = dma.vmem_to_hbm [thread:$0]  (%p2173_p5), %s2337_s16, 512, %s2335_s23, %s1302_s10, %s1976_s11, %s1976_s11, %s1973_s29  }
 0x576   : > { %s1499_s20 = sshll.u32 %s2040_s28, 7  ;;  %s341_s15 = scalar_lea.vmem [#allocation10], %s1471_s17 }
 0x577   : > { %s1315_s12 = sshll.u32 %s341_s15, 4  ;;  %s2372_s23 = scalar_lea.hbm %s2423_s6, %s1499_s20  ;;  %s2374_s12 = int_to_ptr.vmem [resolvable:$true] %s1315_s12 }
 0x578   : > { %s1297_s28 = scalar_lea.sflag [#allocation4], %s2218_s8  ;;  %s1881_s17 = scalar_lea.vmem %s2374_s12, 128 }
 0x579   : > { %p1882_p12 = scmp.ne.s32.totalorder %s2374_s12, %s1881_s17  ;;  %s1978_s10 = smov [#allocation10]  }
 0x57a   : > { %s1885_s21 = sshll.u32 %s1978_s10, 4  ;;  %s1886_s21 = int_to_ptr.vmem [resolvable:$false] %s1885_s21 }
 0x57b   : > { %p1883_p1 = pnand %p1882_p12, %p2173_p5  ;;  %s1887_s30 = scalar_lea.vmem %s1886_s21, 256 }
 0x57c   : > { %p1888_p4 = scmp.lt.s32.totalorder %s2374_s12, %s1886_s21  ;;  %p1889_p0 = scmp.lt.s32.totalorder %s1887_s30, %s1881_s17 }
 0x57d   : > { %p1884_p2 = pneg %p1883_p1 }
 0x57e   : > { %p1890_p9 = por %p1889_p0, %p1888_p4 }
 0x580   : > { %p1891_p11 = pnand %p1890_p9, %p1884_p2 }
 0x597   : > { %v1273_v45 = vpop.f32.mrb[10].mxu1 }
 0x598   : > { %1286 = vrot.lane.b32.xlu0 %v1273_v45, %s1977_s13  ;;  %v1608_v46 = vpop.f32.mrb[11].mxu1 }
 0x5d5   : > { %v1279_v47 = vpop.permute.xlu0 %1278 }
 0x5d6   : > { %v1289_v49 = vsel %vm609_vm2, %v768_v40, %v1279_v47 }
 0x5d9   : > { %v1283_v48 = vpop.permute.xlu1 %1282 }
 0x5da   : > { %v1291_v50 = vsel %vm1290_vm3, %v1289_v49, %v1283_v48 }
 0x60a   : > { %v1287_v51 = vpop.permute.xlu0 %1286 }
 0x60b   : > { %v1293_v52 = vsel %vm1292_vm4, %v1291_v50, %v1287_v51 }
 0x60c   : > { %v1294_v53 = vadd.f32 %v1293_v52, %v2236_v0 }
 0x60e   : > { %1295 = vst.msk [vmem:[%s341_s15] sm:$0xff] %vm350_vm0, %v1294_v53 }
 0x60f   : > { %1894 = shalt.err (!%p1891_p11)
}
 0x610   : > { %s1895_s8 = scalar_lea.hbm %s2372_s23, 128  ;;  %s1899_s11 = scalar_lea.hbm %s2423_s6, 256 }
 0x611   : > { %p1896_p8 = scmp.ne.s32.totalorder %s2372_s23, %s1895_s8  ;;  %p1900_p10 = scmp.lt.u32.totalorder %s2372_s23, %s2423_s6 }
 0x612   : > { %p1901_p3 = scmp.lt.u32.totalorder %s1899_s11, %s1895_s8  ;;  %p1903_p12 = scmp.lt.u32.totalorder %s1895_s8, %s2372_s23 }
 0x613   : > { %p1897_p13 = pnand %p1896_p8, %p2173_p5 }
 0x614   : > { %p1902_p7 = por %p1901_p3, %p1900_p10 }
 0x615   : > { %p1898_p6 = pneg %p1897_p13 }
 0x616   : > { %p1904_p1 = por %p1903_p12, %p1902_p7 }
 0x618   : > { %p1905_p2 = pnand %p1904_p1, %p1898_p6 }
 0x61a   : > { %1908 = shalt.err (!%p1905_p2)
}
 0x61b   : > { %1641 = dma.vmem_to_hbm [thread:$0]  (%p2173_p5), %s2374_s12, 128, %s2372_s23, %s1297_s28  }
 0x61c PF: > { %s2444_s15 = sld [smem:[#allocation18_spill]]  ;;  %s1343_s29 = sand.u32 1, %s1947_s24  }
 0x61d   : > { %p2446_p0 = scmp.ge.s32.totalorder %s1959_s27, 2  ;;  %s1344_s16 = scalar_lea.sflag [#allocation4], %s1343_s29 }
 0x622   : > { %p2445_p4 = scmp.ne.s32.totalorder %s2444_s15, 0 }
 0x624   : > { %p1660_p9 = pnand %p2446_p0, %p2445_p4 }
 0x626   : > { %1938 = dma.done.wait (!%p1660_p9), %s1344_s16, 128  }
 0x627   : > { %1940 = vsyncadd (!%p1660_p9), %s1344_s16, 4294967168  ;;  %s1353_s17 = scalar_lea.sflag [#allocation12], %s1343_s29 }
 0x628   : > { %1942 = dma.done.wait (!%p1660_p9), %s1353_s17, 512  }
 0x629   : > { %1944 = vsyncadd (!%p1660_p9), %s1353_s17, 4294966784  ;;  %p26_p5 = scmp.ge.s32.totalorder %s2159_s22, 4   ;;  %s2447_s24 = smov %s1951_s25 }
 0x62a   : > { %s2448_s25 = smov %s1955_s26  ;;  %s2449_s26 = smov %s2169_s18 }
 0x62b   : > { %s2450_s27 = smov %s2159_s22  ;;  %28 = sbr.rel (!%p26_p5) target bundleno = 9 (0x9), region = 121 }
 0x632   :  { %1358 = vsyncpa [#allocation3], 1 }
 0x633   :  { %1360 = vsyncpa [#allocation3 + $0x1], 1 }
 0x634   :  { %1361 = vsyncpa [#allocation6], 1 }
 0x635   :  { %1362 = vsyncpa [#allocation9], 1 }
 0x636   :  { %1363 = vsyncpa [#allocation4], 1 }
 0x637   :  { %1365 = vsyncpa [#allocation4 + $0x1], 1 }
 0x638   :  { %1366 = vsyncpa [#allocation12], 1 }
 0x639   :  { %1368 = vsyncpa [#allocation12 + $0x1], 1 }

</bundles_post_ra>
